<compile_context>
chip_gen: v5e
topology: v5e:2x2
jax: 0.10.0
libtpu: 0.0.40
codegen_flags: <defaults>
</compile_context>

<pallas_src>
import functools

import jax
import jax.numpy as jnp
from jax.experimental import pallas as pl
from jax.experimental.pallas import tpu as pltpu

# Checkers constants (synthetic, defined in-script — the reference module pulls
# these from its surrounding codebase).
GAMESTATE_SIZE = 32   # 32 playable squares
NUM_ACTIONS = 128     # 32 squares x 4 move directions


def _round_up(a, m):
    return ((a + m - 1) // m) * m


def _mlp_kernel(*refs, compute_dtype):
    """refs = (x_ref, w0, b0, w1, b1, ..., w_last, b_last, out_ref).

    Whole layer stack executed in VMEM for one batch tile:
      h = relu(x @ W0 + b0); h = relu(h @ Wi + bi) ...; out = tanh(h @ Wlast + blast)

    Matmuls run in `compute_dtype` (bf16 by default) with f32 accumulation on the MXU;
    bias-add / ReLU / tanh are done in f32 on the VPU/EUP (v5e-safe), and the final
    store casts to the output ref's dtype (bf16 by default -> half the writeback).
    """
    x_ref = refs[0]
    o_ref = refs[-1]
    param_refs = refs[1:-1]
    n_layers = len(param_refs) // 2

    # Cast the f32 input tile to the MXU dtype in-kernel (cheap VPU op; avoids a
    # separate wrapper-side HBM pass over x).
    h = x_ref[...].astype(compute_dtype)
    for i in range(n_layers):
        w = param_refs[2 * i][...]       # (in, out), compute dtype
        b = param_refs[2 * i + 1][...]   # (1, out), f32
        acc = jnp.dot(h, w, preferred_element_type=jnp.float32) + b   # f32 accum
        if i < n_layers - 1:
            h = jnp.maximum(acc, 0.0).astype(compute_dtype)   # ReLU in f32, recast
        else:
            h = jnp.tanh(acc)                                 # final tanh in f32 (EUP)
    o_ref[...] = h.astype(o_ref.dtype)


def prepare_params(params, *, compute_dtype=jnp.bfloat16, lane_pad=128):
    """One-time parameter preparation (hoisted out of the forward call).

    * Zero-pads every *hidden* feature dim up to a multiple of `lane_pad` (128) so all
      intermediate activations are lane-dense; the extra columns / bias entries / rows
      are zero, so the math is exactly unchanged.
    * Casts weights to `compute_dtype` (MXU inputs) and biases to f32 (epilogue dtype).

    The first layer's input dim (GAMESTATE_SIZE) and the last layer's output dim
    (NUM_ACTIONS) are left untouched so they match x and the requested output shape.
    """
    n = len(params)
    prepared = []
    for i, (w, b) in enumerate(params):
        w = jnp.asarray(w, jnp.float32)
        b = jnp.asarray(b, jnp.float32).reshape(1, -1)
        in_dim, out_dim = w.shape
        in_pad = in_dim if i == 0 else _round_up(in_dim, lane_pad)
        out_pad = out_dim if i == n - 1 else _round_up(out_dim, lane_pad)
        w_p = jnp.zeros((in_pad, out_pad), jnp.float32).at[:in_dim, :out_dim].set(w)
        b_p = jnp.zeros((1, out_pad), jnp.float32).at[:, :out_dim].set(b)
        prepared.append((w_p.astype(compute_dtype), b_p))
    return prepared


def checkers_q_forward(x, prepared_params, *, tile_b=2048,
                       compute_dtype=jnp.bfloat16, out_dtype=jnp.bfloat16):
    """Forward pass.

    x:               (B, GAMESTATE_SIZE) float32 — passed as-is (cast happens in-kernel)
    prepared_params: output of prepare_params() with the matching compute_dtype
    tile_b:          max batch rows per grid step
    out_dtype:       dtype of the returned Q-values (bf16 default halves HBM writeback)
    """
    B, D = x.shape
    out_dim = prepared_params[-1][0].shape[1]

    # Batch tile: multiple of 16 (bf16 sublane-pair friendly, fine for f32 too),
    # capped so the grid has >= 2 steps when B allows it (keeps both v7x TCs busy),
    # and never larger than tile_b.
    tb = min(int(tile_b), _round_up(pl.cdiv(B, 2), 16))
    tb = max(16, tb)
    grid = (pl.cdiv(B, tb),)   # partial last block is masked by Pallas on write

    in_specs = [pl.BlockSpec((tb, D), lambda i: (i, 0))]
    flat_params = []
    for w, b in prepared_params:
        # Constant (0, 0) index_map: parameters stay resident in VMEM, the pipeliner
        # does not re-issue their DMAs on later grid steps.
        in_specs.append(pl.BlockSpec(w.shape, lambda i: (0, 0)))
        in_specs.append(pl.BlockSpec(b.shape, lambda i: (0, 0)))
        flat_params.append(w)
        flat_params.append(b)

    kernel = functools.partial(_mlp_kernel, compute_dtype=compute_dtype)

    return pl.pallas_call(
        kernel,
        out_shape=jax.ShapeDtypeStruct((B, out_dim), out_dtype),
        grid_spec=pltpu.PrefetchScalarGridSpec(
            num_scalar_prefetch=0,
            grid=grid,
            in_specs=in_specs,
            # out_dim == 128 -> one full lane width; long unmasked vst stream except
            # for the (possibly) partial last block.
            out_specs=pl.BlockSpec((tb, out_dim), lambda i: (i, 0)),
        ),
        compiler_params=pltpu.CompilerParams(
            # "parallel" lets v7x shard batch-tile steps across both TensorCores.
            dimension_semantics=("parallel",)),
    )(x, *flat_params)


def init_params(key, num_hidden_layers, hidden_size):
    """Deterministic init matching the PyTorch module's layer shapes.

    Uses uniform(-1/sqrt(fan_in), 1/sqrt(fan_in)) like torch.nn.Linear's default.
    Weights stored as (in_features, out_features); biases as (1, out_features).
    """
    dims = [GAMESTATE_SIZE] + [hidden_size] * (num_hidden_layers + 1) + [NUM_ACTIONS]
    params = []
    for i in range(len(dims) - 1):
        fan_in, fan_out = dims[i], dims[i + 1]
        key, kw, kb = jax.random.split(key, 3)
        bound = 1.0 / jnp.sqrt(jnp.float32(fan_in))
        w = jax.random.uniform(kw, (fan_in, fan_out), jnp.float32, -bound, bound)
        b = jax.random.uniform(kb, (1, fan_out), jnp.float32, -bound, bound)
        params.append((w, b))
    return params


def reference_forward(x, params):
    """Pure-JAX f32 reference (unpadded params) for correctness checking."""
    h = x
    for i, (w, b) in enumerate(params):
        h = h @ w + b
        h = jnp.maximum(h, 0.0) if i < len(params) - 1 else jnp.tanh(h)
    return h


if __name__ == "__main__":
    num_hidden_layers = 2
    hidden_size = 32
    batch = 16

    key = jax.random.PRNGKey(0)
    key, kx = jax.random.split(key)
    x = jax.random.normal(kx, (batch, GAMESTATE_SIZE), jnp.float32)
    params = init_params(key, num_hidden_layers, hidden_size)
    ref = reference_forward(x, params)

    # 1) f32 compute / f32 output path: checks kernel semantics (the zero-padded
    #    hidden lanes contribute exactly 0 to every dot product).
    p_f32 = prepare_params(params, compute_dtype=jnp.float32)
    out_f32 = jax.block_until_ready(
        checkers_q_forward(x, p_f32, compute_dtype=jnp.float32, out_dtype=jnp.float32))
    assert out_f32.shape == (batch, NUM_ACTIONS), out_f32.shape
    assert jnp.allclose(out_f32, ref, atol=1e-5, rtol=1e-5), "f32 path mismatch"

    # 2) Default perf path: bf16 MXU inputs, f32 accumulation/epilogue, bf16 output.
    #    tanh output is bounded in [-1, 1], so an absolute tolerance covering bf16
    #    input + output rounding is used.
    p_bf16 = prepare_params(params)
    out_bf16 = jax.block_until_ready(checkers_q_forward(x, p_bf16))
    assert out_bf16.shape == (batch, NUM_ACTIONS), out_bf16.shape
    assert out_bf16.dtype == jnp.bfloat16
    assert jnp.allclose(out_bf16.astype(jnp.float32), ref, atol=3e-2), "bf16 path mismatch"

    # 3) Non-divisible batch to exercise the masked partial-last-block path
    #    (no wrapper-side pad/slice anymore).
    key, kx2 = jax.random.split(key)
    x2 = jax.random.normal(kx2, (20, GAMESTATE_SIZE), jnp.float32)
    out2 = jax.block_until_ready(checkers_q_forward(x2, p_bf16))
    assert out2.shape == (20, NUM_ACTIONS), out2.shape
    assert jnp.allclose(out2.astype(jnp.float32), reference_forward(x2, params),
                        atol=3e-2), "partial-block path mismatch"

    print("KERNEL_OK")
</pallas_src>

<mosaic_0001>
module attributes {stable_mosaic.version = 11 : i64} {
  func.func @_mlp_kernel(%arg0: i32, %arg1: memref<16x32xf32, #tpu.memory_space<vmem>>, %arg2: memref<32x128xf32, #tpu.memory_space<vmem>>, %arg3: memref<1x128xf32, #tpu.memory_space<vmem>>, %arg4: memref<128x128xf32, #tpu.memory_space<vmem>>, %arg5: memref<1x128xf32, #tpu.memory_space<vmem>>, %arg6: memref<128x128xf32, #tpu.memory_space<vmem>>, %arg7: memref<1x128xf32, #tpu.memory_space<vmem>>, %arg8: memref<128x128xf32, #tpu.memory_space<vmem>>, %arg9: memref<1x128xf32, #tpu.memory_space<vmem>>, %arg10: memref<16x128xf32, #tpu.memory_space<vmem>>) attributes {dimension_semantics = [#tpu.dimension_semantics<parallel>], iteration_bounds = array<i64: 1>, scalar_prefetch = 0 : i64, scratch_operands = 0 : i64, tpu.core_type = #tpu.core_type<tc>, window_params = [{transform_indices = @transform_0, window_bounds = array<i64: 16, 32>}, {pipeline_mode = #tpu.pipeline_mode<synchronous>, transform_indices = @transform_1, window_bounds = array<i64: 32, 128>}, {pipeline_mode = #tpu.pipeline_mode<synchronous>, transform_indices = @transform_2, window_bounds = array<i64: 1, 128>}, {pipeline_mode = #tpu.pipeline_mode<synchronous>, transform_indices = @transform_3, window_bounds = array<i64: 128, 128>}, {pipeline_mode = #tpu.pipeline_mode<synchronous>, transform_indices = @transform_4, window_bounds = array<i64: 1, 128>}, {pipeline_mode = #tpu.pipeline_mode<synchronous>, transform_indices = @transform_5, window_bounds = array<i64: 128, 128>}, {pipeline_mode = #tpu.pipeline_mode<synchronous>, transform_indices = @transform_6, window_bounds = array<i64: 1, 128>}, {pipeline_mode = #tpu.pipeline_mode<synchronous>, transform_indices = @transform_7, window_bounds = array<i64: 128, 128>}, {pipeline_mode = #tpu.pipeline_mode<synchronous>, transform_indices = @transform_8, window_bounds = array<i64: 1, 128>}, {transform_indices = @transform_9, window_bounds = array<i64: 16, 128>}]} {
    %c0 = arith.constant 0 : index
    %c0_0 = arith.constant 0 : index
    %0 = vector.load %arg1[%c0, %c0_0] : memref<16x32xf32, #tpu.memory_space<vmem>>, vector<16x32xf32>
    %c0_1 = arith.constant 0 : index
    %c0_2 = arith.constant 0 : index
    %1 = vector.load %arg2[%c0_1, %c0_2] : memref<32x128xf32, #tpu.memory_space<vmem>>, vector<32x128xf32>
    %c0_3 = arith.constant 0 : index
    %c0_4 = arith.constant 0 : index
    %2 = vector.load %arg3[%c0_3, %c0_4] : memref<1x128xf32, #tpu.memory_space<vmem>>, vector<1x128xf32>
    %cst = arith.constant dense<0.000000e+00> : vector<16x128xf32>
    %3 = tpu.matmul %0, %1, %cst {dimension_numbers = #tpu.dot_dimension_numbers<[1], [0], [0], [1], [0, 0, 1, 1], [], []>} : vector<16x32xf32>, vector<32x128xf32>, vector<16x128xf32> -> vector<16x128xf32>
    %4 = vector.broadcast %2 : vector<1x128xf32> to vector<16x128xf32>
    %5 = arith.addf %3, %4 : vector<16x128xf32>
    %cst_5 = arith.constant 0.000000e+00 : f32
    %6 = vector.broadcast %cst_5 : f32 to vector<16x128xf32>
    %7 = arith.maximumf %5, %6 : vector<16x128xf32>
    %c0_6 = arith.constant 0 : index
    %c0_7 = arith.constant 0 : index
    %8 = vector.load %arg4[%c0_6, %c0_7] : memref<128x128xf32, #tpu.memory_space<vmem>>, vector<128x128xf32>
    %c0_8 = arith.constant 0 : index
    %c0_9 = arith.constant 0 : index
    %9 = vector.load %arg5[%c0_8, %c0_9] : memref<1x128xf32, #tpu.memory_space<vmem>>, vector<1x128xf32>
    %cst_10 = arith.constant dense<0.000000e+00> : vector<16x128xf32>
    %10 = tpu.matmul %7, %8, %cst_10 {dimension_numbers = #tpu.dot_dimension_numbers<[1], [0], [0], [1], [0, 0, 1, 1], [], []>} : vector<16x128xf32>, vector<128x128xf32>, vector<16x128xf32> -> vector<16x128xf32>
    %11 = vector.broadcast %9 : vector<1x128xf32> to vector<16x128xf32>
    %12 = arith.addf %10, %11 : vector<16x128xf32>
    %cst_11 = arith.constant 0.000000e+00 : f32
    %13 = vector.broadcast %cst_11 : f32 to vector<16x128xf32>
    %14 = arith.maximumf %12, %13 : vector<16x128xf32>
    %c0_12 = arith.constant 0 : index
    %c0_13 = arith.constant 0 : index
    %15 = vector.load %arg6[%c0_12, %c0_13] : memref<128x128xf32, #tpu.memory_space<vmem>>, vector<128x128xf32>
    %c0_14 = arith.constant 0 : index
    %c0_15 = arith.constant 0 : index
    %16 = vector.load %arg7[%c0_14, %c0_15] : memref<1x128xf32, #tpu.memory_space<vmem>>, vector<1x128xf32>
    %cst_16 = arith.constant dense<0.000000e+00> : vector<16x128xf32>
    %17 = tpu.matmul %14, %15, %cst_16 {dimension_numbers = #tpu.dot_dimension_numbers<[1], [0], [0], [1], [0, 0, 1, 1], [], []>} : vector<16x128xf32>, vector<128x128xf32>, vector<16x128xf32> -> vector<16x128xf32>
    %18 = vector.broadcast %16 : vector<1x128xf32> to vector<16x128xf32>
    %19 = arith.addf %17, %18 : vector<16x128xf32>
    %cst_17 = arith.constant 0.000000e+00 : f32
    %20 = vector.broadcast %cst_17 : f32 to vector<16x128xf32>
    %21 = arith.maximumf %19, %20 : vector<16x128xf32>
    %c0_18 = arith.constant 0 : index
    %c0_19 = arith.constant 0 : index
    %22 = vector.load %arg8[%c0_18, %c0_19] : memref<128x128xf32, #tpu.memory_space<vmem>>, vector<128x128xf32>
    %c0_20 = arith.constant 0 : index
    %c0_21 = arith.constant 0 : index
    %23 = vector.load %arg9[%c0_20, %c0_21] : memref<1x128xf32, #tpu.memory_space<vmem>>, vector<1x128xf32>
    %cst_22 = arith.constant dense<0.000000e+00> : vector<16x128xf32>
    %24 = tpu.matmul %21, %22, %cst_22 {dimension_numbers = #tpu.dot_dimension_numbers<[1], [0], [0], [1], [0, 0, 1, 1], [], []>} : vector<16x128xf32>, vector<128x128xf32>, vector<16x128xf32> -> vector<16x128xf32>
    %25 = vector.broadcast %23 : vector<1x128xf32> to vector<16x128xf32>
    %26 = arith.addf %24, %25 : vector<16x128xf32>
    %27 = math.tanh %26 : vector<16x128xf32>
    %c0_23 = arith.constant 0 : index
    %c0_24 = arith.constant 0 : index
    %28 = vector.load %arg10[%c0_23, %c0_24] : memref<16x128xf32, #tpu.memory_space<vmem>>, vector<16x128xf32>
    tpu.vector_store %arg10[%c0_23, %c0_24], %27 {strides = array<i32>} : memref<16x128xf32, #tpu.memory_space<vmem>>, vector<16x128xf32>,
    return
  }
  func.func @transform_0(%arg0: i32) -> (i32, i32) {
    %c0_i32 = arith.constant 0 : i32
    %c0_i32_0 = arith.constant 0 : i32
    return %arg0, %c0_i32 : i32, i32
  }
  func.func @transform_1(%arg0: i32) -> (i32, i32) {
    %c0_i32 = arith.constant 0 : i32
    %c0_i32_0 = arith.constant 0 : i32
    %c0_i32_1 = arith.constant 0 : i32
    return %c0_i32, %c0_i32_0 : i32, i32
  }
  func.func @transform_2(%arg0: i32) -> (i32, i32) {
    %c0_i32 = arith.constant 0 : i32
    %c0_i32_0 = arith.constant 0 : i32
    %c0_i32_1 = arith.constant 0 : i32
    return %c0_i32, %c0_i32_0 : i32, i32
  }
  func.func @transform_3(%arg0: i32) -> (i32, i32) {
    %c0_i32 = arith.constant 0 : i32
    %c0_i32_0 = arith.constant 0 : i32
    %c0_i32_1 = arith.constant 0 : i32
    return %c0_i32, %c0_i32_0 : i32, i32
  }
  func.func @transform_4(%arg0: i32) -> (i32, i32) {
    %c0_i32 = arith.constant 0 : i32
    %c0_i32_0 = arith.constant 0 : i32
    %c0_i32_1 = arith.constant 0 : i32
    return %c0_i32, %c0_i32_0 : i32, i32
  }
  func.func @transform_5(%arg0: i32) -> (i32, i32) {
    %c0_i32 = arith.constant 0 : i32
    %c0_i32_0 = arith.constant 0 : i32
    %c0_i32_1 = arith.constant 0 : i32
    return %c0_i32, %c0_i32_0 : i32, i32
  }
  func.func @transform_6(%arg0: i32) -> (i32, i32) {
    %c0_i32 = arith.constant 0 : i32
    %c0_i32_0 = arith.constant 0 : i32
    %c0_i32_1 = arith.constant 0 : i32
    return %c0_i32, %c0_i32_0 : i32, i32
  }
  func.func @transform_7(%arg0: i32) -> (i32, i32) {
    %c0_i32 = arith.constant 0 : i32
    %c0_i32_0 = arith.constant 0 : i32
    %c0_i32_1 = arith.constant 0 : i32
    return %c0_i32, %c0_i32_0 : i32, i32
  }
  func.func @transform_8(%arg0: i32) -> (i32, i32) {
    %c0_i32 = arith.constant 0 : i32
    %c0_i32_0 = arith.constant 0 : i32
    %c0_i32_1 = arith.constant 0 : i32
    return %c0_i32, %c0_i32_0 : i32, i32
  }
  func.func @transform_9(%arg0: i32) -> (i32, i32) {
    %c0_i32 = arith.constant 0 : i32
    %c0_i32_0 = arith.constant 0 : i32
    return %arg0, %c0_i32 : i32, i32
  }
}

</mosaic_0001>

<bundles_post_ra>
// kernel: tpu_custom_call.1
= control target key start
LH: loop header
LB: loop body
LE: loop exit
PB: predicated region body
PF: predicated region fallthrough
CT: control target
= control target key end

     0   :  { %14 = vsyncpa [#allocation3], 0  ;;  %s587_s0 = inlined_call_operand.hbm [shape: f32[16,32], index: 0, kind: input, shape index: {}]   ;;  %s588_s1 = inlined_call_operand.hbm [shape: f32[32,128], index: 1, kind: input, shape index: {}]   ;;  %s589_s2 = inlined_call_operand.vmem [shape: f32[1,128], index: 2, kind: input, shape index: {}]   ;;  %s590_s3 = inlined_call_operand.hbm [shape: f32[128,128], index: 3, kind: input, shape index: {}]   ;;  %s591_s4 = inlined_call_operand.vmem [shape: f32[1,128], index: 4, kind: input, shape index: {}]   ;;  %s592_s5 = inlined_call_operand.hbm [shape: f32[128,128], index: 5, kind: input, shape index: {}]   ;;  %s593_s6 = inlined_call_operand.vmem [shape: f32[1,128], index: 6, kind: input, shape index: {}]   ;;  %s594_s7 = inlined_call_operand.hbm [shape: f32[128,128], index: 7, kind: input, shape index: {}]   ;;  %s595_s8 = inlined_call_operand.vmem [shape: f32[1,128], index: 8, kind: input, shape index: {}]   ;;  %s596_s9 = inlined_call_operand.hbm [shape: f32[16,128], index: 9, kind: output, shape index: {}]  }
   0x1   :  { %15 = vsyncpa [#allocation6], 0 }
   0x2   :  { %16 = vsyncpa [#allocation9], 0 }
   0x3   :  { %17 = vsyncpa [#allocation4], 0  ;;  %s35_s11 = sshll.u32 %s588_s1, 4  ;;  %s481_s12 = smov [#allocation5]   ;;  %s36_s11 = int_to_ptr.hbm [resolvable:$true] %s35_s11 }
   0x4   :  { %s37_s13 = sshll.u32 %s481_s12, 4  ;;  %s65_s16 = sshll.u32 %s592_s5, 4  ;;  %s38_s13 = int_to_ptr.vmem [resolvable:$true] %s37_s13  ;;  %s66_s16 = int_to_ptr.hbm [resolvable:$true] %s65_s16 }
   0x5   :  { %s482_s17 = smov 128   ;;  %s483_s18 = smov 8  }
   0x6   :  { %43 = dma.hbm_to_vmem [thread:$0]  %s36_s11, 512, %s38_s13, [#allocation6], %s482_s17, %s482_s17, %s483_s18  }
   0x7   :  { %s484_s19 = smov [#allocation8]   ;;  %s22_s1 = sshll.u32 %s587_s0, 4  ;;  %s23_s1 = int_to_ptr.hbm [resolvable:$true] %s22_s1 }
   0x8   :  { %s67_s20 = sshll.u32 %s484_s19, 4  ;;  %s50_s24 = sshll.u32 %s590_s3, 4  ;;  %s68_s20 = int_to_ptr.vmem [resolvable:$true] %s67_s20  ;;  %s51_s24 = int_to_ptr.hbm [resolvable:$true] %s50_s24 }
   0x9   :  { %73 = dma.hbm_to_vmem [thread:$0]  %s66_s16, 2048, %s68_s20, [#allocation9], %s482_s17, %s482_s17, %s483_s18  }
   0xa   :  { %s485_s25 = smov [#allocation2]   ;;  %s486_s27 = smov [#allocation7]  }
   0xb   :  { %s24_s26 = sshll.u32 %s485_s25, 4  ;;  %s52_s0 = sshll.u32 %s486_s27, 4  ;;  %s25_s26 = int_to_ptr.vmem [resolvable:$true] %s24_s26  ;;  %s53_s0 = int_to_ptr.vmem [resolvable:$true] %s52_s0 }
   0xc   :  { %30 = dma.hbm_to_vmem [thread:$0]  %s23_s1, 256, %s25_s26, [#allocation3], %s482_s17, %s482_s17, %s483_s18  }
   0xd   :  { %s80_s30 = sshll.u32 %s594_s7, 4  ;;  %s487_s3 = smov [#allocation10]   ;;  %s81_s30 = int_to_ptr.hbm [resolvable:$true] %s80_s30 }
   0xe   :  { %58 = dma.hbm_to_vmem [thread:$0]  %s51_s24, 2048, %s53_s0, [#allocation6], %s482_s17, %s482_s17, %s483_s18  }
   0xf   :  { %s82_s10 = sshll.u32 %s487_s3, 4  ;;  %s83_s10 = int_to_ptr.vmem [resolvable:$true] %s82_s10 }
  0x10   :  { %88 = dma.hbm_to_vmem [thread:$0]  %s81_s30, 2048, %s83_s10, [#allocation9], %s482_s17, %s482_s17, %s483_s18  }
  0x11   :  { %473 = dma.done.wait [#allocation3], 256  }
  0x12   :  { %474 = vsyncadd [#allocation3], 4294967040 }
  0x13   :  { %475 = dma.done.wait [#allocation6], 2560  }
  0x14   :  { %476 = vsyncadd [#allocation6], 4294964736 }
  0x15   :  { %477 = dma.done.wait [#allocation9], 4096  }
  0x16   :  { %478 = vsyncadd [#allocation9], 4294963200  ;;  %v116_v0 = vld [vmem:[#allocation5 + $0x18] sm:$0xff]  ;;  %v115_v1 = vld [vmem:[#allocation5 + $0x10] sm:$0xff]  ;;  %vm121_vm0 = vcmask 261120   ;;  %s296_s21 = sshll.u32 %s596_s9, 4  ;;  %s297_s21 = int_to_ptr.hbm [resolvable:$true] %s296_s21 }
  0x17   :  { %140 = vmatpush.msra.mxu0 %v116_v0  ;;  %v114_v2 = vld [vmem:[#allocation5 + $0x8] sm:$0xff]  ;;  %v168_v3 = vld [vmem:[#allocation7 + $0x78] sm:$0xff]  ;;  %v167_v4 = vld [vmem:[#allocation7 + $0x70] sm:$0xff] }
  0x18   :  { %173 = vmatpush.msra.mxu1 %v168_v3  ;;  %v113_v5 = vld [vmem:[#allocation5] sm:$0xff]  ;;  %v166_v6 = vld [vmem:[#allocation7 + $0x68] sm:$0xff]  ;;  %v111_v7 = vld [vmem:[#allocation2] sm:$0xff] }
  0x19   :  { %141 = vmatpush.msra.mxu0 %v115_v1  ;;  %v165_v8 = vld [vmem:[#allocation7 + $0x60] sm:$0xff]  ;;  %v164_v9 = vld [vmem:[#allocation7 + $0x58] sm:$0xff]  ;;  %v163_v10 = vld [vmem:[#allocation7 + $0x50] sm:$0xff] }
  0x1a   :  { %174 = vmatpush.msra.mxu1 %v167_v4  ;;  %v162_v11 = vld [vmem:[#allocation7 + $0x48] sm:$0xff]  ;;  %v112_v12 = vld [vmem:[#allocation2 + $0x8] sm:$0xff]  ;;  %v161_v13 = vld [vmem:[#allocation7 + $0x40] sm:$0xff] }
  0x1b   :  { %142 = vmatpush.msra.mxu0 %v114_v2  ;;  %v160_v14 = vld [vmem:[#allocation7 + $0x38] sm:$0xff]  ;;  %v159_v15 = vld [vmem:[#allocation7 + $0x30] sm:$0xff]  ;;  %v158_v16 = vld [vmem:[#allocation7 + $0x28] sm:$0xff] }
  0x1c   :  { %175 = vmatpush.msra.mxu1 %v166_v6  ;;  %v157_v17 = vld [vmem:[#allocation7 + $0x20] sm:$0xff]  ;;  %v156_v18 = vld [vmem:[#allocation7 + $0x18] sm:$0xff]  ;;  %v155_v19 = vld [vmem:[#allocation7 + $0x10] sm:$0xff] }
  0x1d   :  { %143 = vmatpush.msra.mxu0 %v113_v5  ;;  %v154_v20 = vld [vmem:[#allocation7 + $0x8] sm:$0xff]  ;;  %v153_v21 = vld [vmem:[#allocation7] sm:$0xff]  ;;  %v213_v22 = vld [vmem:[#allocation8 + $0x78] sm:$0xff] }
  0x1e   :  { %311 = vmatmul.msk.f32.vlgmr.msra.gmra.mxu0 %vm121_vm0, %v111_v7  ;;  %176 = vmatpush.msra.mxu1 %v165_v8  ;;  %v212_v23 = vld [vmem:[#allocation8 + $0x70] sm:$0xff]  ;;  %v211_v24 = vld [vmem:[#allocation8 + $0x68] sm:$0xff]  ;;  %v210_v25 = vld [vmem:[#allocation8 + $0x60] sm:$0xff] }
  0x1f   :  { %218 = vmatpush.msra.mxu2 %v213_v22  ;;  %v209_v26 = vld [vmem:[#allocation8 + $0x58] sm:$0xff]  ;;  %v208_v27 = vld [vmem:[#allocation8 + $0x50] sm:$0xff]  ;;  %v207_v28 = vld [vmem:[#allocation8 + $0x48] sm:$0xff] }
  0x20   :  { %177 = vmatpush.msra.mxu1 %v164_v9  ;;  %v206_v29 = vld [vmem:[#allocation8 + $0x40] sm:$0xff]  ;;  %v205_v30 = vld [vmem:[#allocation8 + $0x38] sm:$0xff]  ;;  %v321_v31 = vld [vmem:[%s589_s2] ss:$0 sm:$0xff] }
  0x21   :  { %219 = vmatpush.msra.mxu2 %v212_v23  ;;  %v204_v32 = vld [vmem:[#allocation8 + $0x30] sm:$0xff]  ;;  %v203_v33 = vld [vmem:[#allocation8 + $0x28] sm:$0xff]  ;;  %v202_v36 = vld [vmem:[#allocation8 + $0x20] sm:$0xff] }
  0x22   :  { %178 = vmatpush.msra.mxu1 %v163_v10  ;;  %v201_v38 = vld [vmem:[#allocation8 + $0x18] sm:$0xff]  ;;  %v200_v42 = vld [vmem:[#allocation8 + $0x10] sm:$0xff]  ;;  %v199_v43 = vld [vmem:[#allocation8 + $0x8] sm:$0xff] }
  0x23   :  { %220 = vmatpush.msra.mxu2 %v211_v24  ;;  %v198_v44 = vld [vmem:[#allocation8] sm:$0xff]  ;;  %v258_v45 = vld [vmem:[#allocation10 + $0x78] sm:$0xff]  ;;  %v257_v46 = vld [vmem:[#allocation10 + $0x70] sm:$0xff] }
  0x24   :  { %179 = vmatpush.msra.mxu1 %v162_v11  ;;  %263 = vmatpush.msra.mxu3 %v258_v45  ;;  %v256_v47 = vld [vmem:[#allocation10 + $0x68] sm:$0xff]  ;;  %v255_v48 = vld [vmem:[#allocation10 + $0x60] sm:$0xff]  ;;  %v254_v49 = vld [vmem:[#allocation10 + $0x58] sm:$0xff] }
  0x25   :  { %221 = vmatpush.msra.mxu2 %v210_v25  ;;  %v253_v50 = vld [vmem:[#allocation10 + $0x50] sm:$0xff]  ;;  %v252_v51 = vld [vmem:[#allocation10 + $0x48] sm:$0xff]  ;;  %v251_v52 = vld [vmem:[#allocation10 + $0x40] sm:$0xff] }
  0x26   :  { %312 = vmatmul.msk.f32.gmra.mxu0 %vm121_vm0, %v112_v12  ;;  %180 = vmatpush.msra.mxu1 %v161_v13  ;;  %v250_v53 = vld [vmem:[#allocation10 + $0x38] sm:$0xff]  ;;  %v322_v54 = vld [vmem:[%s591_s4] ss:$0 sm:$0xff]  ;;  %v248_v56 = vld [vmem:[#allocation10 + $0x28] sm:$0xff] }
  0x27   :  { %222 = vmatpush.msra.mxu2 %v209_v26  ;;  %264 = vmatpush.msra.mxu3 %v257_v46  ;;  %v249_v55 = vld [vmem:[#allocation10 + $0x30] sm:$0xff]  ;;  %v247_v59 = vld [vmem:[#allocation10 + $0x20] sm:$0xff]  ;;  %v246_v61 = vld [vmem:[#allocation10 + $0x18] sm:$0xff] }
  0x28   :  { %181 = vmatpush.msra.mxu1 %v160_v14  ;;  %v245_v1 = vld [vmem:[#allocation10 + $0x10] sm:$0xff]  ;;  %v244_v2 = vld [vmem:[#allocation10 + $0x8] sm:$0xff]  ;;  %v243_v3 = vld [vmem:[#allocation10] sm:$0xff] }
  0x29   :  { %223 = vmatpush.msra.mxu2 %v208_v27  ;;  %265 = vmatpush.msra.mxu3 %v256_v47  ;;  %v323_v4 = vld [vmem:[%s593_s6] ss:$0 sm:$0xff]  ;;  %s488_s6 = smov [#allocation11]  }
  0x2a   :  { %182 = vmatpush.msra.mxu1 %v159_v15  ;;  %v324_v11 = vld [vmem:[%s595_s8] ss:$0 sm:$0xff]  ;;  %s294_s16 = sshll.u32 %s488_s6, 4  ;;  %s295_s16 = int_to_ptr.vmem [resolvable:$true] %s294_s16 }
  0x2b   :  { %224 = vmatpush.msra.mxu2 %v207_v28  ;;  %266 = vmatpush.msra.mxu3 %v255_v48 }
  0x2c   :  { %183 = vmatpush.msra.mxu1 %v158_v16 }
  0x2d   :  { %225 = vmatpush.msra.mxu2 %v206_v29  ;;  %267 = vmatpush.msra.mxu3 %v254_v49 }
  0x2e   :  { %184 = vmatpush.msra.mxu1 %v157_v17 }
  0x2f   :  { %226 = vmatpush.msra.mxu2 %v205_v30  ;;  %268 = vmatpush.msra.mxu3 %v253_v50 }
  0x30   :  { %185 = vmatpush.msra.mxu1 %v156_v18 }
  0x31   :  { %227 = vmatpush.msra.mxu2 %v204_v32  ;;  %269 = vmatpush.msra.mxu3 %v252_v51 }
  0x32   :  { %186 = vmatpush.msra.mxu1 %v155_v19 }
  0x33   :  { %228 = vmatpush.msra.mxu2 %v203_v33  ;;  %270 = vmatpush.msra.mxu3 %v251_v52 }
  0x34   :  { %187 = vmatpush.msra.mxu1 %v154_v20 }
  0x35   :  { %229 = vmatpush.msra.mxu2 %v202_v36  ;;  %271 = vmatpush.msra.mxu3 %v250_v53 }
  0x36   :  { %188 = vmatpush.msra.mxu1 %v153_v21 }
  0x37   :  { %230 = vmatpush.msra.mxu2 %v201_v38  ;;  %272 = vmatpush.msra.mxu3 %v249_v55 }
  0x39   :  { %231 = vmatpush.msra.mxu2 %v200_v42  ;;  %273 = vmatpush.msra.mxu3 %v248_v56 }
  0x3b   :  { %232 = vmatpush.msra.mxu2 %v199_v43  ;;  %274 = vmatpush.msra.mxu3 %v247_v59 }
  0x3d   :  { %233 = vmatpush.msra.mxu2 %v198_v44  ;;  %275 = vmatpush.msra.mxu3 %v246_v61 }
  0x3f   :  { %276 = vmatpush.msra.mxu3 %v245_v1 }
  0x41   :  { %277 = vmatpush.msra.mxu3 %v244_v2 }
  0x43   :  { %278 = vmatpush.msra.mxu3 %v243_v3 }
  0x9b   :  { %v145_v34 = vpop.f32.mrf.mxu0 }
  0x9c   :  { %v146_v35 = vadd.f32 %v321_v31, %v145_v34 }
  0x9e   :  { %v151_v37 = vmax.f32 %v146_v35, 0.0 }
  0xa0   :  { %189 = vmatmul.f32.vlgmr.msra.gmra.mxu1 %v151_v37 }
  0xa3   :  { %v148_v39 = vpop.f32.mrf.mxu0 }
  0xa4   :  { %v149_v40 = vadd.f32 %v321_v31, %v148_v39 }
  0xa6   :  { %v152_v41 = vmax.f32 %v149_v40, 0.0 }
  0xa8   :  { %192 = vmatmul.f32.gmra.mxu1 %v152_v41 }
 0x11d   :  { %v190_v57 = vpop.f32.mrf.mxu1 }
 0x11e   :  { %v191_v58 = vadd.f32 %v322_v54, %v190_v57 }
 0x120   :  { %v196_v60 = vmax.f32 %v191_v58, 0.0 }
 0x122   :  { %234 = vmatmul.f32.vlgmr.msra.gmra.mxu2 %v196_v60 }
 0x125   :  { %v193_v62 = vpop.f32.mrf.mxu1 }
 0x126   :  { %v194_v63 = vadd.f32 %v322_v54, %v193_v62 }
 0x128   :  { %v197_v0 = vmax.f32 %v194_v63, 0.0 }
 0x12a   :  { %237 = vmatmul.f32.gmra.mxu2 %v197_v0 }
 0x1a5   :  { %v235_v5 = vpop.f32.mrf.mxu2 }
 0x1a6   :  { %v236_v6 = vadd.f32 %v323_v4, %v235_v5 }
 0x1a8   :  { %v241_v7 = vmax.f32 %v236_v6, 0.0 }
 0x1aa   :  { %279 = vmatmul.f32.vlgmr.msra.gmra.mxu3 %v241_v7 }
 0x1ad   :  { %v238_v8 = vpop.f32.mrf.mxu2 }
 0x1ae   :  { %v239_v9 = vadd.f32 %v323_v4, %v238_v8 }
 0x1b0   :  { %v242_v10 = vmax.f32 %v239_v9, 0.0 }
 0x1b2   :  { %282 = vmatmul.f32.gmra.mxu3 %v242_v10 }
 0x22d   :  { %v280_v12 = vpop.f32.mrf.mxu3 }
 0x22e   :  { %v281_v13 = vadd.f32 %v324_v11, %v280_v12 }
 0x230   :  { %325 = vtanh.f32 %v281_v13 }
 0x235   :  { %v283_v14 = vpop.f32.mrf.mxu3 }
 0x236   :  { %v326_v15 = vpop.eup %325  ;;  %v284_v16 = vadd.f32 %v324_v11, %v283_v14 }
 0x237   :  { %288 = vst [vmem:[#allocation11] sm:$0xff] %v326_v15 }
 0x238   :  { %327 = vtanh.f32 %v284_v16 }
 0x23e   :  { %v328_v17 = vpop.eup %327 }
 0x23f   :  { %289 = vst [vmem:[#allocation11 + $0x8] sm:$0xff] %v328_v17 }
 0x240   :  { %302 = dma.vmem_to_hbm [thread:$0]  %s295_s16, 256, %s297_s21, [#allocation4], %s482_s17, %s482_s17, %s483_s18  }
 0x241   :  { %479 = dma.done.wait [#allocation4], 256  }
 0x242   :  { %480 = vsyncadd [#allocation4], 4294967040 }
 0x243   :  { %307 = vsyncpa [#allocation3], 1 }
 0x244   :  { %308 = vsyncpa [#allocation6], 1 }
 0x245   :  { %309 = vsyncpa [#allocation9], 1 }
 0x246   :  { %310 = vsyncpa [#allocation4], 1 }

</bundles_post_ra>
